<compile_context>
chip_gen: v7x
topology: tpu7x:2x2x1
jax: 0.10.0
libtpu: 0.0.40
codegen_flags: <defaults>
</compile_context>

<pallas_src>
import functools

import jax
import jax.numpy as jnp
from jax.experimental import pallas as pl
from jax.experimental.pallas import tpu as pltpu


def _round_up(n: int, m: int) -> int:
    return ((n + m - 1) // m) * m


def _dql_mlp_kernel(x_ref, p_ref, o_ref, *, s_p, h1_p, h2_p, a_p):
    """y = relu(relu(relu(x@W1+b1)@W2+b2)@W3+b3) on one batch tile.

    x_ref : [TB, s_p]  bf16 (padded state)
    p_ref : [s_p+h1_p+h2_p+8, max(h1_p,h2_p,a_p)] bf16 packed param slab
    o_ref : [TB, a_p]  f32  (lane-dense padded Q-values)
    """
    r1 = s_p                 # row offset of W2
    r2 = s_p + h1_p          # row offset of W3
    rb = s_p + h1_p + h2_p   # row offset of bias block (b1, b2, b3)

    x = x_ref[...]  # bf16

    # ---- layer 1 ----
    w1 = p_ref[0:s_p, 0:h1_p]                                   # bf16
    b1 = p_ref[rb:rb + 1, 0:h1_p].astype(jnp.float32)           # [1, h1_p]
    h = jnp.dot(x, w1, preferred_element_type=jnp.float32) + b1
    h = jnp.maximum(h, 0.0)

    # ---- layer 2 ----
    w2 = p_ref[r1:r1 + h1_p, 0:h2_p]
    b2 = p_ref[rb + 1:rb + 2, 0:h2_p].astype(jnp.float32)
    h = jnp.dot(h.astype(jnp.bfloat16), w2,
                preferred_element_type=jnp.float32) + b2
    h = jnp.maximum(h, 0.0)

    # ---- layer 3 (output also passes through ReLU, per the module spec) ----
    w3 = p_ref[r2:r2 + h2_p, 0:a_p]
    b3 = p_ref[rb + 2:rb + 3, 0:a_p].astype(jnp.float32)
    h = jnp.dot(h.astype(jnp.bfloat16), w3,
                preferred_element_type=jnp.float32) + b3
    h = jnp.maximum(h, 0.0)

    o_ref[...] = h.astype(o_ref.dtype)


def pack_params(params):
    """Pack (w1,b1,w2,b2,w3,b3) into one bf16 slab with 128-aligned regions.

    Do this once (e.g. after every optimizer step / target-network sync), not
    per forward call.
    """
    w1, b1 = params["w1"], params["b1"]
    w2, b2 = params["w2"], params["b2"]
    w3, b3 = params["w3"], params["b3"]

    s, h1 = w1.shape
    h2 = w2.shape[1]
    a = w3.shape[1]

    s_p, h1_p, h2_p, a_p = (_round_up(d, 128) for d in (s, h1, h2, a))
    wmax = max(h1_p, h2_p, a_p)
    rows = s_p + h1_p + h2_p + 8  # 8 sublane-aligned rows for the 3 biases

    slab = jnp.zeros((rows, wmax), jnp.bfloat16)
    slab = slab.at[0:s, 0:h1].set(w1.astype(jnp.bfloat16))
    slab = slab.at[s_p:s_p + h1, 0:h2].set(w2.astype(jnp.bfloat16))
    slab = slab.at[s_p + h1_p:s_p + h1_p + h2, 0:a].set(w3.astype(jnp.bfloat16))

    rb = s_p + h1_p + h2_p
    slab = slab.at[rb, 0:h1].set(b1.reshape(-1).astype(jnp.bfloat16))
    slab = slab.at[rb + 1, 0:h2].set(b2.reshape(-1).astype(jnp.bfloat16))
    slab = slab.at[rb + 2, 0:a].set(b3.reshape(-1).astype(jnp.bfloat16))

    dims = dict(s=s, h1=h1, h2=h2, a=a,
                s_p=s_p, h1_p=h1_p, h2_p=h2_p, a_p=a_p)
    return slab, dims


def dql_network_forward(state, slab, dims, *, batch_tile=256):
    """Fused forward pass.  state: [batch, state_values] f32 -> [batch, A] f32."""
    b = state.shape[0]
    s, a = dims["s"], dims["a"]
    s_p, h1_p, h2_p, a_p = dims["s_p"], dims["h1_p"], dims["h2_p"], dims["a_p"]

    # Pad batch to a sublane multiple, choose a batch tile, pad to full tiles.
    b_p = _round_up(b, 8)
    tb = min(_round_up(batch_tile, 8), b_p)
    b_p = _round_up(b_p, tb)
    grid = (b_p // tb,)

    # Lane-dense, bf16 activation slab (zeros in the padded region are harmless:
    # padded weight rows/cols are zero too).
    x = jnp.zeros((b_p, s_p), jnp.bfloat16)
    x = x.at[:b, :s].set(state.astype(jnp.bfloat16))

    kernel = functools.partial(_dql_mlp_kernel,
                               s_p=s_p, h1_p=h1_p, h2_p=h2_p, a_p=a_p)

    out = pl.pallas_call(
        kernel,
        out_shape=jax.ShapeDtypeStruct((b_p, a_p), jnp.float32),
        grid=grid,
        in_specs=[
            # activations: tiled over the batch grid axis
            pl.BlockSpec((tb, s_p), lambda i: (i, 0)),
            # packed params: constant block index -> DMA'd once, VMEM-resident
            pl.BlockSpec(slab.shape, lambda i: (0, 0)),
        ],
        out_specs=pl.BlockSpec((tb, a_p), lambda i: (i, 0)),
        compiler_params=pltpu.CompilerParams(
            dimension_semantics=("parallel",)),
    )(x, slab)

    return out[:b, :a]


def init_params(key, state_values, action_values, fc1_values=64, fc2_values=64):
    """Deterministic init mimicking nn.Linear's uniform(-1/sqrt(fan_in), +)."""
    ks = jax.random.split(key, 6)

    def linear(kw, kb, fan_in, fan_out):
        bound = 1.0 / jnp.sqrt(jnp.float32(fan_in))
        w = jax.random.uniform(kw, (fan_in, fan_out), jnp.float32, -bound, bound)
        b = jax.random.uniform(kb, (fan_out,), jnp.float32, -bound, bound)
        return w, b

    w1, b1 = linear(ks[0], ks[1], state_values, fc1_values)
    w2, b2 = linear(ks[2], ks[3], fc1_values, fc2_values)
    w3, b3 = linear(ks[4], ks[5], fc2_values, action_values)
    return {"w1": w1, "b1": b1, "w2": w2, "b2": b2, "w3": w3, "b3": b3}


def _reference(x, params):
    """Plain-JAX reference using the same bf16-rounded params (f32 math)."""
    r = lambda t: t.astype(jnp.bfloat16).astype(jnp.float32)
    hp = jax.lax.Precision.HIGHEST
    xb = r(x)
    h = jnp.maximum(jnp.dot(xb, r(params["w1"]), precision=hp) + r(params["b1"]), 0.0)
    h = jnp.maximum(jnp.dot(h, r(params["w2"]), precision=hp) + r(params["b2"]), 0.0)
    return jnp.maximum(jnp.dot(h, r(params["w3"]), precision=hp) + r(params["b3"]), 0.0)


if __name__ == "__main__":
    key = jax.random.PRNGKey(0)
    k_param, k_state, k_big = jax.random.split(key, 3)

    batch = 2
    state_values = 16
    action_values = 4

    params = init_params(k_param, state_values, action_values,
                         fc1_values=64, fc2_values=64)
    slab, dims = pack_params(params)

    # Small inference-style batch.
    state = jax.random.normal(k_state, (batch, state_values), jnp.float32)
    out = jax.block_until_ready(dql_network_forward(state, slab, dims))
    expected = _reference(state, params)
    assert out.shape == (batch, action_values)
    assert jnp.allclose(out, expected, atol=1e-3, rtol=1e-3), (
        float(jnp.max(jnp.abs(out - expected))))

    # Training-style batch exercising the parallel batch grid axis
    # (batch_tile forced small so grid > 1) with the slab staying resident.
    big = jax.random.normal(k_big, (20, state_values), jnp.float32)
    out_big = jax.block_until_ready(
        dql_network_forward(big, slab, dims, batch_tile=8))
    exp_big = _reference(big, params)
    assert out_big.shape == (20, action_values)
    assert jnp.allclose(out_big, exp_big, atol=1e-3, rtol=1e-3), (
        float(jnp.max(jnp.abs(out_big - exp_big))))

    print("KERNEL_OK")
</pallas_src>

<mosaic_0001>
module attributes {stable_mosaic.version = 11 : i64} {
  func.func @_dql_mlp_kernel(%arg0: i32, %arg1: memref<8x128xbf16, #tpu.memory_space<vmem>>, %arg2: memref<392x128xbf16, #tpu.memory_space<vmem>>, %arg3: memref<8x128xf32, #tpu.memory_space<vmem>>) attributes {dimension_semantics = [#tpu.dimension_semantics<parallel>], iteration_bounds = array<i64: 1>, scalar_prefetch = 0 : i64, scratch_operands = 0 : i64, tpu.core_type = #tpu.core_type<tc>, window_params = [{transform_indices = @transform_0, window_bounds = array<i64: 8, 128>}, {pipeline_mode = #tpu.pipeline_mode<synchronous>, transform_indices = @transform_1, window_bounds = array<i64: 392, 128>}, {transform_indices = @transform_2, window_bounds = array<i64: 8, 128>}]} {
    %c0 = arith.constant 0 : index
    %c0_0 = arith.constant 0 : index
    %0 = vector.load %arg1[%c0, %c0_0] : memref<8x128xbf16, #tpu.memory_space<vmem>>, vector<8x128xbf16>
    %c0_1 = arith.constant 0 : index
    %c0_2 = arith.constant 0 : index
    %1 = vector.load %arg2[%c0_1, %c0_2] : memref<392x128xbf16, #tpu.memory_space<vmem>>, vector<128x128xbf16>
    %c384 = arith.constant 384 : index
    %c0_3 = arith.constant 0 : index
    %2 = vector.load %arg2[%c384, %c0_3] : memref<392x128xbf16, #tpu.memory_space<vmem>>, vector<1x128xbf16>
    %3 = arith.extf %2 : vector<1x128xbf16> to vector<1x128xf32>
    %cst = arith.constant dense<0.000000e+00> : vector<8x128xf32>
    %4 = tpu.matmul %0, %1, %cst {dimension_numbers = #tpu.dot_dimension_numbers<[1], [0], [0], [1], [0, 0, 1, 1], [], []>} : vector<8x128xbf16>, vector<128x128xbf16>, vector<8x128xf32> -> vector<8x128xf32>
    %5 = vector.broadcast %3 : vector<1x128xf32> to vector<8x128xf32>
    %6 = arith.addf %4, %5 : vector<8x128xf32>
    %cst_4 = arith.constant 0.000000e+00 : f32
    %7 = vector.broadcast %cst_4 : f32 to vector<8x128xf32>
    %8 = arith.maximumf %6, %7 : vector<8x128xf32>
    %c128 = arith.constant 128 : index
    %c0_5 = arith.constant 0 : index
    %9 = vector.load %arg2[%c128, %c0_5] : memref<392x128xbf16, #tpu.memory_space<vmem>>, vector<128x128xbf16>
    %c385 = arith.constant 385 : index
    %c0_6 = arith.constant 0 : index
    %10 = vector.load %arg2[%c385, %c0_6] : memref<392x128xbf16, #tpu.memory_space<vmem>>, vector<1x128xbf16>
    %11 = arith.extf %10 : vector<1x128xbf16> to vector<1x128xf32>
    %12 = arith.truncf %8 : vector<8x128xf32> to vector<8x128xbf16>
    %cst_7 = arith.constant dense<0.000000e+00> : vector<8x128xf32>
    %13 = tpu.matmul %12, %9, %cst_7 {dimension_numbers = #tpu.dot_dimension_numbers<[1], [0], [0], [1], [0, 0, 1, 1], [], []>} : vector<8x128xbf16>, vector<128x128xbf16>, vector<8x128xf32> -> vector<8x128xf32>
    %14 = vector.broadcast %11 : vector<1x128xf32> to vector<8x128xf32>
    %15 = arith.addf %13, %14 : vector<8x128xf32>
    %cst_8 = arith.constant 0.000000e+00 : f32
    %16 = vector.broadcast %cst_8 : f32 to vector<8x128xf32>
    %17 = arith.maximumf %15, %16 : vector<8x128xf32>
    %c256 = arith.constant 256 : index
    %c0_9 = arith.constant 0 : index
    %18 = vector.load %arg2[%c256, %c0_9] : memref<392x128xbf16, #tpu.memory_space<vmem>>, vector<128x128xbf16>
    %c386 = arith.constant 386 : index
    %c0_10 = arith.constant 0 : index
    %19 = vector.load %arg2[%c386, %c0_10] : memref<392x128xbf16, #tpu.memory_space<vmem>>, vector<1x128xbf16>
    %20 = arith.extf %19 : vector<1x128xbf16> to vector<1x128xf32>
    %21 = arith.truncf %17 : vector<8x128xf32> to vector<8x128xbf16>
    %cst_11 = arith.constant dense<0.000000e+00> : vector<8x128xf32>
    %22 = tpu.matmul %21, %18, %cst_11 {dimension_numbers = #tpu.dot_dimension_numbers<[1], [0], [0], [1], [0, 0, 1, 1], [], []>} : vector<8x128xbf16>, vector<128x128xbf16>, vector<8x128xf32> -> vector<8x128xf32>
    %23 = vector.broadcast %20 : vector<1x128xf32> to vector<8x128xf32>
    %24 = arith.addf %22, %23 : vector<8x128xf32>
    %cst_12 = arith.constant 0.000000e+00 : f32
    %25 = vector.broadcast %cst_12 : f32 to vector<8x128xf32>
    %26 = arith.maximumf %24, %25 : vector<8x128xf32>
    %c0_13 = arith.constant 0 : index
    %c0_14 = arith.constant 0 : index
    %27 = vector.load %arg3[%c0_13, %c0_14] : memref<8x128xf32, #tpu.memory_space<vmem>>, vector<8x128xf32>
    tpu.vector_store %arg3[%c0_13, %c0_14], %26 {strides = array<i32>} : memref<8x128xf32, #tpu.memory_space<vmem>>, vector<8x128xf32>,
    return
  }
  func.func @transform_0(%arg0: i32) -> (i32, i32) {
    %c0_i32 = arith.constant 0 : i32
    %c0_i32_0 = arith.constant 0 : i32
    return %arg0, %c0_i32 : i32, i32
  }
  func.func @transform_1(%arg0: i32) -> (i32, i32) {
    %c0_i32 = arith.constant 0 : i32
    %c0_i32_0 = arith.constant 0 : i32
    %c0_i32_1 = arith.constant 0 : i32
    return %c0_i32, %c0_i32_0 : i32, i32
  }
  func.func @transform_2(%arg0: i32) -> (i32, i32) {
    %c0_i32 = arith.constant 0 : i32
    %c0_i32_0 = arith.constant 0 : i32
    return %arg0, %c0_i32 : i32, i32
  }
}

</mosaic_0001>

<bundles_post_ra>
// kernel: tpu_custom_call.1
= control target key start
LH: loop header
LB: loop body
LE: loop exit
PB: predicated region body
PF: predicated region fallthrough
CT: control target
= control target key end

     0   :  { %7 = vsyncpa [#allocation3], 0  ;;  %s699_s0 = inlined_call_operand.hbm [shape: bf16[8,128], index: 0, kind: input, shape index: {}]   ;;  %s700_s1 = inlined_call_operand.hbm [shape: bf16[392,128], index: 1, kind: input, shape index: {}]   ;;  %s701_s2 = inlined_call_operand.hbm [shape: f32[8,128], index: 2, kind: output, shape index: {}]  }
   0x1   :  { %8 = vsyncpa [#allocation6], 0 }
   0x2   :  { %9 = vsyncpa [#allocation4], 0  ;;  %s604_s9 = smov [#allocation2]   ;;  %s605_s11 = smov [#allocation5]  }
   0x3   :  { %s16_s10 = sshll.u32 %s604_s9, 4  ;;  %s25_s12 = sshll.u32 %s605_s11, 4  ;;  %s17_s10 = int_to_ptr.vmem [resolvable:$true] %s16_s10  ;;  %s626_s12 = int_to_ptr.vmem [resolvable:$true] %s25_s12 }
   0x4   :  { %s532_s15 = scalar_lea.hbm %s699_s0, 64 }
   0x5   :  { %p533_p0 = scmp.ne.s32.totalorder %s699_s0, %s532_s15  ;;  %p536_p1 = scmp.lt.u32.totalorder %s532_s15, %s699_s0 }
   0x7   :  { %p538_p2 = pnand %p536_p1, %p533_p0 }
   0x9   :  { %541 = shalt.err (!%p538_p2)
}
   0xa   :  { %s542_s20 = scalar_lea.vmem %s17_s10, 64  ;;  %p547_p4 = scmp.lt.s32.totalorder %s17_s10, %s17_s10 }
   0xb   :  { %p543_p3 = scmp.ne.s32.totalorder %s17_s10, %s542_s20  ;;  %p548_p5 = scmp.lt.s32.totalorder %s542_s20, %s542_s20 }
   0xd   :  { %p549_p6 = por %p548_p5, %p547_p4 }
   0xf   :  { %p550_p7 = pnand %p549_p6, %p543_p3 }
  0x11   :  { %553 = shalt.err (!%p550_p7)
}
  0x12   :  { %19 = dma.hbm_to_vmem [thread:$0]  %s699_s0, 64, %s17_s10, [#allocation3]  }
  0x13   :  { %s554_s25 = scalar_lea.hbm %s700_s1, 3136 }
  0x14   :  { %p555_p8 = scmp.ne.s32.totalorder %s700_s1, %s554_s25  ;;  %p558_p9 = scmp.lt.u32.totalorder %s554_s25, %s700_s1 }
  0x16   :  { %p560_p10 = pnand %p558_p9, %p555_p8 }
  0x18   :  { %563 = shalt.err (!%p560_p10)
}
  0x19   :  { %s564_s30 = scalar_lea.vmem %s626_s12, 3136  ;;  %p569_p12 = scmp.lt.s32.totalorder %s626_s12, %s626_s12 }
  0x1a   :  { %p565_p11 = scmp.ne.s32.totalorder %s626_s12, %s564_s30  ;;  %p570_p13 = scmp.lt.s32.totalorder %s564_s30, %s564_s30 }
  0x1c   :  { %p571_p0 = por %p570_p13, %p569_p12 }
  0x1e   :  { %p572_p1 = pnand %p571_p0, %p565_p11 }
  0x20   :  { %575 = shalt.err (!%p572_p1)
}
  0x21   :  { %s606_s0 = smov 64   ;;  %s607_s3 = smov 4  }
  0x22   :  { %31 = dma.hbm_to_vmem [thread:$0]  %s700_s1, 3136, %s626_s12, [#allocation6], %s606_s0, %s606_s0, %s607_s3  }
  0x23   :  { %598 = dma.done.wait [#allocation3], 64  }
  0x24   :  { %599 = vsyncadd [#allocation3], 4294967232 }
  0x25   :  { %600 = dma.done.wait [#allocation6], 3136  }
  0x26   :  { %601 = vsyncadd [#allocation6], 4294964160  ;;  %v608_v0 = vmov 0.0   ;;  %vm609_vm0 = vmmov 0   ;;  %v508_v1 = vld [vmem:[#allocation5] sm:$0xff]   ;;  %v509_v2 = vld [vmem:[#allocation5 + $0x8] sm:$0xff]   ;;  %v58_v24 = vlaneseq }
  0x27   :  { %441 = vmatprep.subr.bf16.mxu0 %v608_v0  ;;  %457 = vmatprep.mubr.msk.bf16.mxu0 %vm609_vm0, %v608_v0  ;;  %v510_v3 = vld [vmem:[#allocation5 + $0x10] sm:$0xff]   ;;  %v516_v4 = vld [vmem:[#allocation5 + $0x40] sm:$0xff]   ;;  %v511_v5 = vld [vmem:[#allocation5 + $0x18] sm:$0xff]   ;;  %s610_s1 = smov [#allocation7]  }
  0x28   :  { %461 = vmatprep.subr.bf16.mxu1 %v608_v0  ;;  %477 = vmatprep.mubr.msk.bf16.mxu1 %vm609_vm0, %v608_v0  ;;  %v517_v6 = vld [vmem:[#allocation5 + $0x48] sm:$0xff]   ;;  %v512_v7 = vld [vmem:[#allocation5 + $0x20] sm:$0xff]   ;;  %v518_v8 = vld [vmem:[#allocation5 + $0x50] sm:$0xff]   ;;  %v59_v25 = vshrl.u32 %v58_v24, 7  ;;  %s380_s6 = sshll.u32 %s610_s1, 4  ;;  %s381_s6 = int_to_ptr.vmem [resolvable:$true] %s380_s6 }
  0x29   :  { %442 = vmatpush3.bf16.msra.mxu0 %v508_v1  ;;  %462 = vmatpush3.bf16.msra.mxu1 %v516_v4  ;;  %v513_v9 = vld [vmem:[#allocation5 + $0x28] sm:$0xff]   ;;  %v519_v10 = vld [vmem:[#allocation5 + $0x58] sm:$0xff]   ;;  %v514_v11 = vld [vmem:[#allocation5 + $0x30] sm:$0xff]   ;;  %s576_s7 = scalar_lea.vmem %s381_s6, 128  ;;  %p581_p3 = scmp.lt.s32.totalorder %s381_s6, %s381_s6 }
  0x2a   :  { %443 = vmatprep.subr.bf16.mxu0 %v608_v0  ;;  %463 = vmatprep.subr.bf16.mxu1 %v608_v0  ;;  %v520_v12 = vld [vmem:[#allocation5 + $0x60] sm:$0xff]   ;;  %v515_v13 = vld [vmem:[#allocation5 + $0x38] sm:$0xff]   ;;  %v521_v14 = vld [vmem:[#allocation5 + $0x68] sm:$0xff]   ;;  %v60_v28 = vsub.s32 0, %v59_v25  ;;  %v170_v39 = vsub.s32 1, %v59_v25  ;;  %v282_v50 = vsub.s32 2, %v59_v25  ;;  %p577_p2 = scmp.ne.s32.totalorder %s381_s6, %s576_s7  ;;  %p582_p4 = scmp.lt.s32.totalorder %s576_s7, %s576_s7 }
  0x2b   :  { %v39_v15 = vld [vmem:[#allocation2] sm:$0xf]  ;;  %v522_v16 = vld [vmem:[#allocation5 + $0x70] sm:$0xff]   ;;  %v524_v18 = vld [vmem:[#allocation5 + $0x80] sm:$0xff]  }
  0x2c   :  { %v523_v17 = vld [vmem:[#allocation5 + $0x78] sm:$0xff]   ;;  %v525_v19 = vld [vmem:[#allocation5 + $0x88] sm:$0xff]   ;;  %v526_v20 = vld [vmem:[#allocation5 + $0x90] sm:$0xff]   ;;  %p583_p5 = por %p582_p4, %p581_p3 }
  0x2d   :  { %444 = vmatpush3.bf16.msra.mxu0 %v509_v2  ;;  %464 = vmatpush3.bf16.msra.mxu1 %v517_v6  ;;  %v527_v21 = vld [vmem:[#allocation5 + $0x98] sm:$0xff]   ;;  %v528_v22 = vld [vmem:[#allocation5 + $0xa0] sm:$0xff]   ;;  %v529_v23 = vld [vmem:[#allocation5 + $0xa8] sm:$0xff]  }
  0x2e   :  { %445 = vmatprep.subr.bf16.mxu0 %v608_v0  ;;  %465 = vmatprep.subr.bf16.mxu1 %v608_v0  ;;  %v56_v26 = vld [vmem:[#allocation5 + $0xc0] sm:$0x1]  ;;  %v530_v37 = vld [vmem:[#allocation5 + $0xb0] sm:$0xff]   ;;  %v531_v38 = vld [vmem:[#allocation5 + $0xb8] sm:$0xff]   ;;  %p584_p6 = pnand %p583_p5, %p577_p2 }
  0x2f   :  { %v57_v27 = vunpack.c.l.bf16 %v56_v26  ;;  %v277_v48 = vld [vmem:[#allocation5 + $0xc0] sm:$0x2] }
  0x30   :  { %v278_v49 = vunpack.c.l.bf16 %v277_v48 }
  0x31   :  { %446 = vmatpush3.bf16.msra.mxu0 %v510_v3  ;;  %466 = vmatpush3.bf16.msra.mxu1 %v518_v8  ;;  %v61_v29 = vrot.slane %v57_v27, %v60_v28  ;;  %v171_v40 = vrot.slane %v57_v27, %v170_v39 }
  0x32   :  { %447 = vmatprep.subr.bf16.mxu0 %v608_v0  ;;  %467 = vmatprep.subr.bf16.mxu1 %v608_v0  ;;  %v283_v51 = vrot.slane %v278_v49, %v282_v50 }
  0x35   :  { %448 = vmatpush3.bf16.msra.mxu0 %v511_v5  ;;  %468 = vmatpush3.bf16.msra.mxu1 %v519_v10 }
  0x36   :  { %449 = vmatprep.subr.bf16.mxu0 %v608_v0  ;;  %469 = vmatprep.subr.bf16.mxu1 %v608_v0 }
  0x39   :  { %450 = vmatpush3.bf16.msra.mxu0 %v512_v7  ;;  %470 = vmatpush3.bf16.msra.mxu1 %v520_v12 }
  0x3a   :  { %451 = vmatprep.subr.bf16.mxu0 %v608_v0  ;;  %471 = vmatprep.subr.bf16.mxu1 %v608_v0 }
  0x3d   :  { %452 = vmatpush3.bf16.msra.mxu0 %v513_v9  ;;  %472 = vmatpush3.bf16.msra.mxu1 %v521_v14 }
  0x3e   :  { %453 = vmatprep.subr.bf16.mxu0 %v608_v0  ;;  %473 = vmatprep.subr.bf16.mxu1 %v608_v0 }
  0x41   :  { %454 = vmatpush3.bf16.msra.mxu0 %v514_v11  ;;  %474 = vmatpush3.bf16.msra.mxu1 %v522_v16 }
  0x42   :  { %455 = vmatprep.subr.bf16.mxu0 %v608_v0  ;;  %475 = vmatprep.subr.bf16.mxu1 %v608_v0 }
  0x45   :  { %456 = vmatpush3.bf16.msra.mxu0 %v515_v13  ;;  %476 = vmatpush3.bf16.msra.mxu1 %v523_v17 }
  0x46   :  { %481 = vmatprep.subr.bf16.mxu0 %v608_v0 }
  0x48   :  { %458 = vmatmul.mubr.bf16.vlgmr.msra.gmra.mrb[0].mxu0 %v39_v15 }
  0x49   :  { %497 = vmatprep.mubr.msk.bf16.mxu0 %vm609_vm0, %v608_v0  ;;  %482 = vmatpush3.bf16.msra.mxu0 %v524_v18 }
  0x4a   :  { %483 = vmatprep.subr.bf16.mxu0 %v608_v0 }
  0x4d   :  { %484 = vmatpush3.bf16.msra.mxu0 %v525_v19 }
  0x4e   :  { %485 = vmatprep.subr.bf16.mxu0 %v608_v0 }
  0x51   :  { %486 = vmatpush3.bf16.msra.mxu0 %v526_v20 }
  0x52   :  { %487 = vmatprep.subr.bf16.mxu0 %v608_v0 }
  0x55   :  { %488 = vmatpush3.bf16.msra.mxu0 %v527_v21 }
  0x56   :  { %489 = vmatprep.subr.bf16.mxu0 %v608_v0 }
  0x59   :  { %490 = vmatpush3.bf16.msra.mxu0 %v528_v22 }
  0x5a   :  { %491 = vmatprep.subr.bf16.mxu0 %v608_v0 }
  0x5d   :  { %492 = vmatpush3.bf16.msra.mxu0 %v529_v23 }
  0x5e   :  { %493 = vmatprep.subr.bf16.mxu0 %v608_v0 }
  0x61   :  { %494 = vmatpush3.bf16.msra.mxu0 %v530_v37 }
  0x62   :  { %495 = vmatprep.subr.bf16.mxu0 %v608_v0 }
  0x65   :  { %496 = vmatpush3.bf16.msra.mxu0 %v531_v38 }
 0x11b   :  { %v144_v30 = vpop.f32.mrb[0].mxu0 }
 0x11c   :  { %v145_v31 = vadd.f32 %v144_v30, %v61_v29  ;;  %v459_v32 = vpop.f32.mrb[1].mxu0 }
 0x11d   :  { %v147_v33 = vpop.f32.mrb[2].mxu0 }
 0x11e   :  { %v150_v34 = vmax.f32 %v145_v31, 0.0  ;;  %v460_v35 = vpop.f32.mrb[3].mxu0 }
 0x120   :  { %v167_v36 = vpack.c.bf16 %v150_v34, %v150_v34 }
 0x122   :  { %478 = vmatmul.mubr.bf16.vlgmr.msra.gmra.mrb[0].mxu1 %v167_v36 }
 0x1f5   :  { %v254_v41 = vpop.f32.mrb[0].mxu1 }
 0x1f6   :  { %v255_v42 = vadd.f32 %v254_v41, %v171_v40  ;;  %v479_v43 = vpop.f32.mrb[1].mxu1 }
 0x1f7   :  { %v257_v44 = vpop.f32.mrb[2].mxu1 }
 0x1f8   :  { %v260_v45 = vmax.f32 %v255_v42, 0.0  ;;  %v480_v46 = vpop.f32.mrb[3].mxu1 }
 0x1fa   :  { %v279_v47 = vpack.c.bf16 %v260_v45, %v260_v45 }
 0x1fc   :  { %498 = vmatmul.mubr.bf16.vlgmr.msra.gmra.mrb[4].mxu0 %v279_v47 }
 0x2cf   :  { %v366_v52 = vpop.f32.mrb[4].mxu0 }
 0x2d0   :  { %v367_v53 = vadd.f32 %v366_v52, %v283_v51  ;;  %v499_v54 = vpop.f32.mrb[5].mxu0 }
 0x2d1   :  { %v369_v55 = vpop.f32.mrb[6].mxu0 }
 0x2d2   :  { %v372_v56 = vmax.f32 %v367_v53, 0.0  ;;  %v500_v57 = vpop.f32.mrb[7].mxu0 }
 0x2d4   :  { %373 = vst [vmem:[#allocation7] sm:$0xff] %v372_v56 }
 0x2d5   :  { %587 = shalt.err (!%p584_p6)
}
 0x2d6   :  { %s588_s10 = scalar_lea.hbm %s701_s2, 128 }
 0x2d7   :  { %p589_p7 = scmp.ne.s32.totalorder %s701_s2, %s588_s10  ;;  %p592_p8 = scmp.lt.u32.totalorder %s588_s10, %s701_s2 }
 0x2d9   :  { %p594_p9 = pnand %p592_p8, %p589_p7 }
 0x2db   :  { %597 = shalt.err (!%p594_p9)
}
 0x2dc   :  { %383 = dma.vmem_to_hbm [thread:$0]  %s381_s6, 128, %s701_s2, [#allocation4]  }
 0x2dd   :  { %602 = dma.done.wait [#allocation4], 128  }
 0x2de   :  { %603 = vsyncadd [#allocation4], 4294967168 }
 0x2df   :  { %387 = vsyncpa [#allocation3], 1 }
 0x2e0   :  { %388 = vsyncpa [#allocation6], 1 }
 0x2e1   :  { %389 = vsyncpa [#allocation4], 1 }

</bundles_post_ra>
